<compile_context>
chip_gen: v7x
topology: tpu7x:2x2x1
jax: 0.10.0
libtpu: 0.0.40
codegen_flags: <defaults>
</compile_context>

<pallas_src>
import functools

import jax
import jax.numpy as jnp
from jax.experimental import pallas as pl
from jax.experimental.pallas import tpu as pltpu


def _round_up(x, m):
    return ((x + m - 1) // m) * m


def _vmem_capacity_bytes():
    """Per-generation VMEM capacity (v5e/v6e: 128 MiB, v7x: 64 MiB per TC)."""
    try:
        info = pltpu.get_tpu_info()
        cap = getattr(info, "vmem_capacity_bytes", None)
        if cap:
            return int(cap)
    except Exception:
        pass
    return 64 << 20  # conservative default (v7x-sized)


# ----------------------------------------------------------------------------
# Kernels
# ----------------------------------------------------------------------------
def _ln_relu_epilogue(y, p_ref, o_ref, *, d_out_true, mask_lanes):
    """bias + LayerNorm(eps=1e-6) + ReLU on an f32 (tile_m, d_out_p) tile."""
    params = p_ref[...].astype(jnp.float32)        # (3, d_out_p)
    bias = params[0:1, :]
    gamma = params[1:2, :]
    beta = params[2:3, :]

    y = y + bias
    if mask_lanes:
        lane = jax.lax.broadcasted_iota(jnp.int32, y.shape, 1)
        mask = (lane < d_out_true).astype(jnp.float32)
        y = y * mask                               # padded lanes -> 0

    inv_d = 1.0 / d_out_true
    mean = jnp.sum(y, axis=-1, keepdims=True) * inv_d
    diff = y - mean
    if mask_lanes:
        diff = diff * mask                         # keep padded lanes out of var
    var = jnp.sum(diff * diff, axis=-1, keepdims=True) * inv_d   # two-pass var
    inv = jax.lax.rsqrt(var + 1e-6)

    normed = diff * inv * gamma + beta             # padded lanes: gamma=beta=0
    o_ref[...] = jnp.maximum(normed, 0.0).astype(o_ref.dtype)


def _transition_kernel_single_k(x_ref, w_ref, p_ref, o_ref, *,
                                precision, compute_dtype, d_out_true,
                                mask_lanes):
    # d_in fits one panel: no accumulator round-trip, dot straight into epilogue.
    x = x_ref[...].astype(compute_dtype)
    y = jnp.dot(x, w_ref[...],
                preferred_element_type=jnp.float32, precision=precision)
    _ln_relu_epilogue(y, p_ref, o_ref,
                      d_out_true=d_out_true, mask_lanes=mask_lanes)


def _transition_kernel_multi_k(x_ref, w_ref, p_ref, o_ref, acc_ref, *,
                               tile_k, w_resident, precision, compute_dtype,
                               d_out_true, mask_lanes):
    k = pl.program_id(1)

    @pl.when(k == 0)
    def _init():
        acc_ref[...] = jnp.zeros_like(acc_ref)

    x = x_ref[...].astype(compute_dtype)
    if w_resident:
        # Whole W lives in VMEM (fetched once); slice this K panel in place.
        off = pl.multiple_of(k * tile_k, tile_k)
        w = w_ref[pl.ds(off, tile_k), :]
    else:
        w = w_ref[...]
    acc_ref[...] += jnp.dot(x, w,
                            preferred_element_type=jnp.float32,
                            precision=precision)

    @pl.when(k == pl.num_programs(1) - 1)
    def _finalize():
        _ln_relu_epilogue(acc_ref[...], p_ref, o_ref,
                          d_out_true=d_out_true, mask_lanes=mask_lanes)


# ----------------------------------------------------------------------------
# Parameter prep (one-time, static) + kernel launcher
# ----------------------------------------------------------------------------
def prepare_transition_params(weight, bias, gamma, beta, *,
                              compute_dtype=jnp.bfloat16):
    """One-time parameter prep: transpose, cast, lane-pad, pack.

    Done outside the per-call path so the kernel only streams activations;
    weights are static across calls.
    """
    d_out, d_in = weight.shape
    d_out_p = _round_up(d_out, 128)                      # lane-dense output
    w_t = weight.T.astype(compute_dtype)                 # (d_in, d_out)
    params = jnp.stack([bias, gamma, beta]).astype(jnp.float32)   # (3, d_out)
    if d_out_p != d_out:
        w_t = jnp.pad(w_t, ((0, 0), (0, d_out_p - d_out)))
        params = jnp.pad(params, ((0, 0), (0, d_out_p - d_out)))
    return {
        "w_t": w_t,
        "params": params,
        "d_in": d_in,
        "d_out": d_out,
        "d_out_p": d_out_p,
        "compute_dtype": jnp.dtype(compute_dtype),
    }


def transition_apply(x, prep, *, tile_m=None, tile_k=512, out_dtype=None):
    """Fused Linear -> LayerNorm(eps=1e-6) -> ReLU using prepared params."""
    batch, seq, d_in = x.shape
    assert d_in == prep["d_in"], "input feature dim mismatch"
    d_out, d_out_p = prep["d_out"], prep["d_out_p"]
    compute_dtype = prep["compute_dtype"]
    w_t, params = prep["w_t"], prep["params"]
    if out_dtype is None:
        out_dtype = x.dtype
    M = batch * seq
    x2d = x.reshape(M, d_in)          # leading-dim collapse: no data movement

    x_b = jnp.dtype(x.dtype).itemsize
    w_b = jnp.dtype(compute_dtype).itemsize
    out_b = jnp.dtype(out_dtype).itemsize

    # ---- VMEM budget: generation-aware, no hard 64 MiB clamp ---------------
    vmem_cap = _vmem_capacity_bytes()
    vmem_budget = int(vmem_cap * 0.85)

    # ---- K (reduction) tiling: prefer a 128-multiple divisor of d_in -------
    if d_in <= tile_k:
        tile_k_eff, k_pad, n_k = d_in, 0, 1
    else:
        tile_k_eff = None
        base = (min(tile_k, d_in) // 128) * 128
        for cand in range(base, 0, -128):
            if d_in % cand == 0:
                tile_k_eff = cand
                break
        if tile_k_eff is None:          # d_in not a multiple of 128 (rare)
            tile_k_eff = _round_up(min(tile_k, d_in), 128)
        k_pad = (-d_in) % tile_k_eff
        n_k = (d_in + k_pad) // tile_k_eff
    d_in_p = d_in + k_pad

    # ---- Weight residency: fetch W once when it fits comfortably -----------
    w_bytes = d_in_p * d_out_p * w_b
    w_resident = (n_k == 1) or (2 * w_bytes <= vmem_budget // 2)

    if k_pad:
        # Rare fallback: zero padding contributes zero to the accumulation.
        w_t = jnp.pad(w_t, ((0, k_pad), (0, 0)))
        x2d = jnp.pad(x2d, ((0, 0), (0, k_pad)))

    # ---- M (row) tiling: largest tile that fits the VMEM budget ------------
    # Double-buffered x/out/params (+ W counted at 2x) + f32 accumulator.
    fixed = (2 * (w_bytes if w_resident else tile_k_eff * d_out_p * w_b)
             + 2 * 3 * d_out_p * 4)
    per_row = (2 * tile_k_eff * x_b + 2 * d_out_p * out_b
               + (0 if n_k == 1 else 4 * d_out_p))
    rows_fit = max(16, (vmem_budget - fixed) // per_row)

    tile_m_req = 1024 if tile_m is None else tile_m
    tile_m_cap = max(16, min(tile_m_req, int(rows_fit), 1024))
    tile_m_cap = max(16, (tile_m_cap // 16) * 16)        # bf16 sublane packing

    if M <= tile_m_cap:
        if M >= 256:
            # Split the parallel row axis into >=2 tiles so megacore can shard.
            tile_m_eff = _round_up(pl.cdiv(M, 2), 16)
        else:
            tile_m_eff = _round_up(M, 16)
    else:
        tile_m_eff = tile_m_cap
    n_m = pl.cdiv(M, tile_m_eff)

    vmem_est = fixed + tile_m_eff * per_row
    vmem_limit = int(min(max(vmem_est * 3 // 2 + (1 << 20), 32 << 20),
                         vmem_budget))

    precision = (jax.lax.Precision.HIGHEST
                 if compute_dtype == jnp.dtype(jnp.float32)
                 else jax.lax.Precision.DEFAULT)
    common = dict(precision=precision, compute_dtype=compute_dtype,
                  d_out_true=d_out, mask_lanes=(d_out_p != d_out))

    if n_k == 1:
        kernel = functools.partial(_transition_kernel_single_k, **common)
        grid = (n_m,)
        in_specs = [
            pl.BlockSpec((tile_m_eff, d_in_p), lambda i: (i, 0)),
            pl.BlockSpec((d_in_p, d_out_p), lambda i: (0, 0)),    # resident W
            pl.BlockSpec((3, d_out_p), lambda i: (0, 0)),
        ]
        out_specs = pl.BlockSpec((tile_m_eff, d_out_p), lambda i: (i, 0))
        scratch = []
        dim_sem = ("parallel",)
    else:
        kernel = functools.partial(_transition_kernel_multi_k,
                                   tile_k=tile_k_eff, w_resident=w_resident,
                                   **common)
        grid = (n_m, n_k)
        if w_resident:
            # Constant block index -> W DMA'd into VMEM exactly once.
            w_spec = pl.BlockSpec((d_in_p, d_out_p), lambda i, k: (0, 0))
        else:
            # TODO(synk): on v5e a deeper buffer (pipeline_mode=pl.Buffered(3))
            # would help hide DMA latency for the streamed W panels.
            w_spec = pl.BlockSpec((tile_k_eff, d_out_p), lambda i, k: (k, 0))
        in_specs = [
            pl.BlockSpec((tile_m_eff, tile_k_eff), lambda i, k: (i, k)),
            w_spec,
            pl.BlockSpec((3, d_out_p), lambda i, k: (0, 0)),
        ]
        out_specs = pl.BlockSpec((tile_m_eff, d_out_p), lambda i, k: (i, 0))
        scratch = [pltpu.VMEM((tile_m_eff, d_out_p), jnp.float32)]
        dim_sem = ("parallel", "arbitrary")

    out2d = pl.pallas_call(
        kernel,
        out_shape=jax.ShapeDtypeStruct((M, d_out_p), out_dtype),
        grid_spec=pltpu.PrefetchScalarGridSpec(
            num_scalar_prefetch=0,
            grid=grid,
            in_specs=in_specs,
            out_specs=out_specs,
            scratch_shapes=scratch),
        compiler_params=pltpu.CompilerParams(
            dimension_semantics=dim_sem,
            vmem_limit_bytes=vmem_limit),
    )(x2d, w_t, params)

    if d_out_p != d_out:
        # Toy/non-aligned d_out only; real deployments should use d_out % 128 == 0.
        out2d = out2d[:, :d_out]
    return out2d.reshape(batch, seq, d_out)


def transition(x, weight, bias, gamma, beta, *,
               compute_dtype=jnp.bfloat16, tile_m=None, tile_k=512,
               out_dtype=None):
    """Convenience wrapper: one-shot prep + apply (prep is static; reuse it)."""
    prep = prepare_transition_params(weight, bias, gamma, beta,
                                     compute_dtype=compute_dtype)
    return transition_apply(x, prep, tile_m=tile_m, tile_k=tile_k,
                            out_dtype=out_dtype)


# ----------------------------------------------------------------------------
# Reference + tests
# ----------------------------------------------------------------------------
def _reference(x, weight, bias, gamma, beta):
    y = jnp.einsum("bsi,oi->bso", x, weight,
                   precision=jax.lax.Precision.HIGHEST) + bias
    mean = jnp.mean(y, axis=-1, keepdims=True)
    var = jnp.mean((y - mean) ** 2, axis=-1, keepdims=True)
    normed = (y - mean) * jax.lax.rsqrt(var + 1e-6) * gamma + beta
    return jnp.maximum(normed, 0.0)


if __name__ == "__main__":
    key = jax.random.PRNGKey(0)

    # ---- Case 1/2: module-sized toy shapes (single-K, lane-padded d_out) ----
    batch, seq, d_in, d_out = 2, 8, 32, 32
    k_x, k_w, k_b, k_g, k_be, k2 = jax.random.split(key, 6)
    x = jax.random.normal(k_x, (batch, seq, d_in), dtype=jnp.float32)
    weight = jax.random.normal(k_w, (d_out, d_in), dtype=jnp.float32) * 0.1
    bias = jax.random.normal(k_b, (d_out,), dtype=jnp.float32) * 0.01
    gamma = jnp.ones((d_out,), jnp.float32) + 0.05 * jax.random.normal(
        k_g, (d_out,), dtype=jnp.float32)
    beta = 0.05 * jax.random.normal(k_be, (d_out,), dtype=jnp.float32)

    ref = _reference(x, weight, bias, gamma, beta)

    # Exact f32 matmul path: tight check of the fused LN/ReLU math.
    out_f32 = jax.block_until_ready(
        transition(x, weight, bias, gamma, beta, compute_dtype=jnp.float32))
    assert out_f32.shape == (batch, seq, d_out)
    assert jnp.allclose(out_f32, ref, atol=1e-3, rtol=1e-3), (
        float(jnp.max(jnp.abs(out_f32 - ref))))

    # Default fast path: bf16 operands on the MXU with f32 accumulation.
    out_bf = jax.block_until_ready(transition(x, weight, bias, gamma, beta))
    assert out_bf.shape == (batch, seq, d_out)
    assert jnp.allclose(out_bf, ref, atol=5e-2, rtol=5e-2), (
        float(jnp.max(jnp.abs(out_bf - ref))))

    # ---- Case 3: multi-K path with VMEM-resident W (lane-dense d_out) -------
    d_in2, d_out2 = 1024, 128
    k_x2, k_w2, k_b2, k_g2, k_be2 = jax.random.split(k2, 5)
    x2 = jax.random.normal(k_x2, (batch, seq, d_in2), dtype=jnp.float32)
    weight2 = jax.random.normal(k_w2, (d_out2, d_in2), jnp.float32) * (1.0 / 32)
    bias2 = 0.01 * jax.random.normal(k_b2, (d_out2,), jnp.float32)
    gamma2 = jnp.ones((d_out2,), jnp.float32) + 0.05 * jax.random.normal(
        k_g2, (d_out2,), dtype=jnp.float32)
    beta2 = 0.05 * jax.random.normal(k_be2, (d_out2,), dtype=jnp.float32)

    ref2 = _reference(x2, weight2, bias2, gamma2, beta2)
    prep2 = prepare_transition_params(weight2, bias2, gamma2, beta2,
                                      compute_dtype=jnp.float32)
    out2 = jax.block_until_ready(transition_apply(x2, prep2))
    assert out2.shape == (batch, seq, d_out2)
    assert jnp.allclose(out2, ref2, atol=2e-3, rtol=2e-3), (
        float(jnp.max(jnp.abs(out2 - ref2))))

    print("KERNEL_OK")
</pallas_src>

<mosaic_0001>
module attributes {stable_mosaic.version = 11 : i64} {
  func.func @_transition_kernel_single_k(%arg0: i32, %arg1: memref<16x32xf32, #tpu.memory_space<vmem>>, %arg2: memref<32x128xf32, #tpu.memory_space<vmem>>, %arg3: memref<3x128xf32, #tpu.memory_space<vmem>>, %arg4: memref<16x128xf32, #tpu.memory_space<vmem>>) attributes {dimension_semantics = [#tpu.dimension_semantics<parallel>], iteration_bounds = array<i64: 1>, scalar_prefetch = 0 : i64, scratch_operands = 0 : i64, tpu.core_type = #tpu.core_type<tc>, window_params = [{transform_indices = @transform_0, window_bounds = array<i64: 16, 32>}, {pipeline_mode = #tpu.pipeline_mode<synchronous>, transform_indices = @transform_1, window_bounds = array<i64: 32, 128>}, {pipeline_mode = #tpu.pipeline_mode<synchronous>, transform_indices = @transform_2, window_bounds = array<i64: 3, 128>}, {transform_indices = @transform_3, window_bounds = array<i64: 16, 128>}]} {
    %c0 = arith.constant 0 : index
    %c0_0 = arith.constant 0 : index
    %0 = vector.load %arg1[%c0, %c0_0] : memref<16x32xf32, #tpu.memory_space<vmem>>, vector<16x32xf32>
    %c0_1 = arith.constant 0 : index
    %c0_2 = arith.constant 0 : index
    %1 = vector.load %arg2[%c0_1, %c0_2] : memref<32x128xf32, #tpu.memory_space<vmem>>, vector<32x128xf32>
    %cst = arith.constant dense<0.000000e+00> : vector<16x128xf32>
    %2 = tpu.matmul %0, %1, %cst {dimension_numbers = #tpu.dot_dimension_numbers<[1], [0], [0], [1], [0, 0, 1, 1], [], []>, precision = #tpu.contract_precision<fp32>} : vector<16x32xf32>, vector<32x128xf32>, vector<16x128xf32> -> vector<16x128xf32>
    %c0_3 = arith.constant 0 : index
    %c0_4 = arith.constant 0 : index
    %3 = vector.load %arg3[%c0_3, %c0_4] : memref<3x128xf32, #tpu.memory_space<vmem>>, vector<3x128xf32>
    %4 = vector.extract_strided_slice %3 {offsets = [0, 0], sizes = [1, 128], strides = [1, 1]} : vector<3x128xf32> to vector<1x128xf32>
    %5 = vector.extract_strided_slice %3 {offsets = [1, 0], sizes = [1, 128], strides = [1, 1]} : vector<3x128xf32> to vector<1x128xf32>
    %6 = vector.extract_strided_slice %3 {offsets = [2, 0], sizes = [1, 128], strides = [1, 1]} : vector<3x128xf32> to vector<1x128xf32>
    %7 = vector.broadcast %4 : vector<1x128xf32> to vector<16x128xf32>
    %8 = arith.addf %2, %7 : vector<16x128xf32>
    %9 = tpu.iota {dimensions = array<i32: 1>} : vector<16x128xi32>
    %c32_i32 = arith.constant 32 : i32
    %10 = vector.broadcast %c32_i32 : i32 to vector<16x128xi32>
    %11 = arith.cmpi slt, %9, %10 : vector<16x128xi32>
    %12 = arith.extui %11 : vector<16x128xi1> to vector<16x128xi32>
    %13 = arith.sitofp %12 : vector<16x128xi32> to vector<16x128xf32>
    %14 = arith.mulf %8, %13 : vector<16x128xf32>
    %cst_5 = arith.constant dense<0.000000e+00> : vector<16xf32>
    %15 = vector.multi_reduction <add>, %14, %cst_5 [1] : vector<16x128xf32> to vector<16xf32>
    %16 = vector.shape_cast %15 : vector<16xf32> to vector<16x1xf32>
    %cst_6 = arith.constant 3.125000e-02 : f32
    %17 = vector.broadcast %cst_6 : f32 to vector<16x1xf32>
    %18 = arith.mulf %16, %17 : vector<16x1xf32>
    %19 = vector.broadcast %18 : vector<16x1xf32> to vector<16x128xf32>
    %20 = arith.subf %14, %19 : vector<16x128xf32>
    %21 = arith.mulf %20, %13 : vector<16x128xf32>
    %22 = arith.mulf %21, %21 : vector<16x128xf32>
    %cst_7 = arith.constant dense<0.000000e+00> : vector<16xf32>
    %23 = vector.multi_reduction <add>, %22, %cst_7 [1] : vector<16x128xf32> to vector<16xf32>
    %24 = vector.shape_cast %23 : vector<16xf32> to vector<16x1xf32>
    %cst_8 = arith.constant 3.125000e-02 : f32
    %25 = vector.broadcast %cst_8 : f32 to vector<16x1xf32>
    %26 = arith.mulf %24, %25 : vector<16x1xf32>
    %cst_9 = arith.constant 9.99999997E-7 : f32
    %27 = vector.broadcast %cst_9 : f32 to vector<16x1xf32>
    %28 = arith.addf %26, %27 : vector<16x1xf32>
    %29 = math.rsqrt %28 : vector<16x1xf32>
    %30 = vector.broadcast %29 : vector<16x1xf32> to vector<16x128xf32>
    %31 = arith.mulf %21, %30 : vector<16x128xf32>
    %32 = vector.broadcast %5 : vector<1x128xf32> to vector<16x128xf32>
    %33 = arith.mulf %31, %32 : vector<16x128xf32>
    %34 = vector.broadcast %6 : vector<1x128xf32> to vector<16x128xf32>
    %35 = arith.addf %33, %34 : vector<16x128xf32>
    %cst_10 = arith.constant 0.000000e+00 : f32
    %36 = vector.broadcast %cst_10 : f32 to vector<16x128xf32>
    %37 = arith.maximumf %35, %36 : vector<16x128xf32>
    %c0_11 = arith.constant 0 : index
    %c0_12 = arith.constant 0 : index
    %38 = vector.load %arg4[%c0_11, %c0_12] : memref<16x128xf32, #tpu.memory_space<vmem>>, vector<16x128xf32>
    tpu.vector_store %arg4[%c0_11, %c0_12], %37 {strides = array<i32>} : memref<16x128xf32, #tpu.memory_space<vmem>>, vector<16x128xf32>,
    return
  }
  func.func @transform_0(%arg0: i32) -> (i32, i32) {
    %c0_i32 = arith.constant 0 : i32
    %c0_i32_0 = arith.constant 0 : i32
    return %arg0, %c0_i32 : i32, i32
  }
  func.func @transform_1(%arg0: i32) -> (i32, i32) {
    %c0_i32 = arith.constant 0 : i32
    %c0_i32_0 = arith.constant 0 : i32
    %c0_i32_1 = arith.constant 0 : i32
    return %c0_i32, %c0_i32_0 : i32, i32
  }
  func.func @transform_2(%arg0: i32) -> (i32, i32) {
    %c0_i32 = arith.constant 0 : i32
    %c0_i32_0 = arith.constant 0 : i32
    %c0_i32_1 = arith.constant 0 : i32
    return %c0_i32, %c0_i32_0 : i32, i32
  }
  func.func @transform_3(%arg0: i32) -> (i32, i32) {
    %c0_i32 = arith.constant 0 : i32
    %c0_i32_0 = arith.constant 0 : i32
    return %arg0, %c0_i32 : i32, i32
  }
}

</mosaic_0001>

<bundles_post_ra>
// kernel: tpu_custom_call.1
= control target key start
LH: loop header
LB: loop body
LE: loop exit
PB: predicated region body
PF: predicated region fallthrough
CT: control target
= control target key end

     0   :  { %8 = vsyncpa [#allocation3], 0  ;;  %s985_s0 = inlined_call_operand.hbm [shape: f32[16,32], index: 0, kind: input, shape index: {}]   ;;  %s986_s1 = inlined_call_operand.hbm [shape: f32[32,128], index: 1, kind: input, shape index: {}]   ;;  %s987_s2 = inlined_call_operand.vmem [shape: f32[3,128], index: 2, kind: input, shape index: {}]   ;;  %s988_s3 = inlined_call_operand.hbm [shape: f32[16,128], index: 3, kind: output, shape index: {}]  }
   0x1   :  { %9 = vsyncpa [#allocation6], 0 }
   0x2   :  { %10 = vsyncpa [#allocation4], 0  ;;  %s899_s12 = smov [#allocation2]   ;;  %s827_s16 = scalar_lea.hbm %s985_s0, 256 }
   0x3   :  { %s16_s13 = sshll.u32 %s899_s12, 4  ;;  %p828_p0 = scmp.ne.s32.totalorder %s985_s0, %s827_s16  ;;  %s17_s13 = int_to_ptr.vmem [resolvable:$true] %s16_s13 }
   0x4   :  { %p831_p1 = scmp.lt.u32.totalorder %s827_s16, %s985_s0 }
   0x6   :  { %p833_p2 = pnand %p831_p1, %p828_p0 }
   0x8   :  { %836 = shalt.err (!%p833_p2)
}
   0x9   :  { %s837_s21 = scalar_lea.vmem %s17_s13, 256  ;;  %p842_p4 = scmp.lt.s32.totalorder %s17_s13, %s17_s13 }
   0xa   :  { %p838_p3 = scmp.ne.s32.totalorder %s17_s13, %s837_s21  ;;  %p843_p5 = scmp.lt.s32.totalorder %s837_s21, %s837_s21 }
   0xc   :  { %p844_p6 = por %p843_p5, %p842_p4 }
   0xe   :  { %p845_p7 = pnand %p844_p6, %p838_p3 }
  0x10   :  { %848 = shalt.err (!%p845_p7)
}
  0x11   :  { %s900_s22 = smov 128   ;;  %s901_s23 = smov 8  }
  0x12   :  { %22 = dma.hbm_to_vmem [thread:$0]  %s985_s0, 256, %s17_s13, [#allocation3], %s900_s22, %s900_s22, %s901_s23  }
  0x13   :  { %s902_s26 = smov [#allocation5]   ;;  %s849_s30 = scalar_lea.hbm %s986_s1, 512 }
  0x14   :  { %s28_s27 = sshll.u32 %s902_s26, 4  ;;  %p850_p8 = scmp.ne.s32.totalorder %s986_s1, %s849_s30  ;;  %s29_s27 = int_to_ptr.vmem [resolvable:$true] %s28_s27 }
  0x15   :  { %p853_p9 = scmp.lt.u32.totalorder %s849_s30, %s986_s1 }
  0x17   :  { %p855_p10 = pnand %p853_p9, %p850_p8 }
  0x19   :  { %858 = shalt.err (!%p855_p10)
}
  0x1a   :  { %s859_s8 = scalar_lea.vmem %s29_s27, 512  ;;  %p864_p12 = scmp.lt.s32.totalorder %s29_s27, %s29_s27 }
  0x1b   :  { %p860_p11 = scmp.ne.s32.totalorder %s29_s27, %s859_s8  ;;  %p865_p13 = scmp.lt.s32.totalorder %s859_s8, %s859_s8 }
  0x1d   :  { %p866_p0 = por %p865_p13, %p864_p12 }
  0x1f   :  { %p867_p1 = pnand %p866_p0, %p860_p11 }
  0x21   :  { %870 = shalt.err (!%p867_p1)
}
  0x22   :  { %34 = dma.hbm_to_vmem [thread:$0]  %s986_s1, 512, %s29_s27, [#allocation6], %s900_s22, %s900_s22, %s901_s23  }
  0x23   :  { %893 = dma.done.wait [#allocation3], 256  }
  0x24   :  { %894 = vsyncadd [#allocation3], 4294967040 }
  0x25   :  { %895 = dma.done.wait [#allocation6], 512  }
  0x26   :  { %896 = vsyncadd [#allocation6], 4294966784  ;;  %vm54_vm0 = vcmask 261120   ;;  %v45_v0 = vld [vmem:[#allocation5] sm:$0xff]  ;;  %v46_v1 = vld [vmem:[#allocation5 + $0x8] sm:$0xff]  ;;  %v50_v46 = vlaneseq  ;;  %v903_v59 = vmov 0.0  }
  0x27   :  { %v47_v2 = vld [vmem:[#allocation5 + $0x10] sm:$0xff]  ;;  %v62_v3 = vand.u32 4294901760, %v45_v0  ;;  %v65_v4 = vand.u32 4294901760, %v46_v1  ;;  %v48_v5 = vld [vmem:[#allocation5 + $0x18] sm:$0xff] }
  0x28   :  { %v68_v6 = vand.u32 4294901760, %v47_v2  ;;  %v43_v7 = vld [vmem:[#allocation2] sm:$0xff]  ;;  %v44_v8 = vld [vmem:[#allocation2 + $0x8] sm:$0xff]  ;;  %v71_v9 = vand.u32 4294901760, %v48_v5  ;;  %v51_v47 = vshrl.u32 %v50_v46, 7  ;;  %v590_v50 = vand.u32 127, %v50_v46 }
  0x29   :  { %v56_v10 = vsel %vm54_vm0, %v43_v7, 0  ;;  %v59_v11 = vsel %vm54_vm0, %v44_v8, 0  ;;  %v757_v12 = vpack.c.bf16 %v65_v4, %v62_v3  ;;  %v152_v15 = vsub.f32 %v45_v0, %v62_v3  ;;  %v49_v49 = vld [vmem:[%s987_s2] sm:$0x7]  ;;  %s904_s2 = smov [#allocation7]  }
  0x2a   :  { %v955_v13 = vand.u32 4294901760, %v56_v10  ;;  %v957_v14 = vand.u32 4294901760, %v59_v11  ;;  %v761_v16 = vpack.c.bf16 %v71_v9, %v68_v6  ;;  %v159_v17 = vsub.f32 %v46_v1, %v65_v4  ;;  %s641_s11 = sshll.u32 %s904_s2, 4  ;;  %s642_s11 = int_to_ptr.vmem [resolvable:$true] %s641_s11 }
  0x2b   :  { %v166_v18 = vsub.f32 %v47_v2, %v68_v6  ;;  %v173_v19 = vsub.f32 %v48_v5, %v71_v9  ;;  %758 = vmatprep.subr.bf16.mxu1 %v757_v12  ;;  %782 = vmatprep.subr.bf16.mxu0 %v757_v12  ;;  %v153_v22 = vand.u32 4294901760, %v152_v15  ;;  %v52_v48 = vsub.s32 0, %v51_v47  ;;  %s871_s12 = scalar_lea.vmem %s642_s11, 256  ;;  %p876_p3 = scmp.lt.s32.totalorder %s642_s11, %s642_s11 }
  0x2c   :  { %v131_v20 = vsub.f32 %v56_v10, %v955_v13  ;;  %v141_v21 = vsub.f32 %v59_v11, %v957_v14  ;;  %760 = vmatpush3.bf16.msra.mxu1 %v757_v12  ;;  %784 = vmatpush3.bf16.msra.mxu0 %v757_v12  ;;  %v160_v23 = vand.u32 4294901760, %v159_v17  ;;  %v773_v44 = vpack.c.bf16 %v159_v17, %v152_v15  ;;  %p872_p2 = scmp.ne.s32.totalorder %s642_s11, %s871_s12  ;;  %p877_p4 = scmp.lt.s32.totalorder %s871_s12, %s871_s12 }
  0x2d   :  { %v167_v24 = vand.u32 4294901760, %v166_v18  ;;  %v174_v25 = vand.u32 4294901760, %v173_v19  ;;  %762 = vmatprep.subr.bf16.mxu1 %v761_v16  ;;  %786 = vmatprep.subr.bf16.mxu0 %v761_v16  ;;  %v154_v28 = vsub.f32 %v152_v15, %v153_v22  ;;  %v777_v45 = vpack.c.bf16 %v173_v19, %v166_v18 }
  0x2e   :  { %v132_v26 = vand.u32 4294901760, %v131_v20  ;;  %v142_v27 = vand.u32 4294901760, %v141_v21  ;;  %v161_v29 = vsub.f32 %v159_v17, %v160_v23  ;;  %v789_v30 = vpack.c.bf16 %v160_v23, %v153_v22  ;;  %p878_p5 = por %p877_p4, %p876_p3 }
  0x2f   :  { %v168_v31 = vsub.f32 %v166_v18, %v167_v24  ;;  %v175_v32 = vsub.f32 %v173_v19, %v174_v25  ;;  %v155_v35 = vand.u32 4294901760, %v154_v28  ;;  %v793_v43 = vpack.c.bf16 %v174_v25, %v167_v24 }
  0x30   :  { %v133_v33 = vsub.f32 %v131_v20, %v132_v26  ;;  %732 = vmatprep.mubr.f32.mxu0 %v132_v26  ;;  %v143_v34 = vsub.f32 %v141_v21, %v142_v27  ;;  %764 = vmatpush3.bf16.msra.mxu1 %v761_v16  ;;  %v162_v36 = vand.u32 4294901760, %v161_v29  ;;  %v53_v51 = vrot.slane %v49_v49, %v52_v48  ;;  %p879_p6 = pnand %p878_p5, %p872_p2 }
  0x31   :  { %788 = vmatpush3.bf16.msra.mxu0 %v761_v16  ;;  %v169_v37 = vand.u32 4294901760, %v168_v31  ;;  %v176_v38 = vand.u32 4294901760, %v175_v32  ;;  %vm591_vm1 = vcmp.lt.s32.totalorder %v590_v50, 32  ;;  %v628_v17 = vsub.s32 2, %v51_v47 }
  0x32   :  { %v134_v39 = vand.u32 4294901760, %v133_v33  ;;  %v144_v40 = vand.u32 4294901760, %v143_v34  ;;  %790 = vmatprep.subr.bf16.mxu0 %v789_v30  ;;  %v765_v41 = vpack.c.bf16 %v162_v36, %v155_v35  ;;  %v654_v60 = vsel %vm591_vm1, 1.0, %v903_v59 }
  0x33   :  { %v769_v42 = vpack.c.bf16 %v176_v38, %v169_v37 }
  0x34   :  { %699 = vmatprep.mubr.f32.mxu1 %v134_v39  ;;  %733 = vmatmul.mubr.f32.vlgmr.msra.gmra.mrb[0].mxu0 %v142_v27 }
  0x35   :  { %700 = vmatmul.mubr.f32.vlgmr.msra.gmra.mrb[0].mxu1 %v144_v40  ;;  %766 = vmatprep.subr.bf16.mxu1 %v765_v41 }
  0x36   :  { %768 = vmatpush3.bf16.msra.mxu1 %v765_v41  ;;  %792 = vmatpush3.bf16.msra.mxu0 %v789_v30 }
  0x37   :  { %770 = vmatprep.subr.bf16.mxu1 %v769_v42  ;;  %794 = vmatprep.subr.bf16.mxu0 %v793_v43 }
  0x38   :  { %710 = vmatprep.mubr.f32.mxu1 %v955_v13  ;;  %743 = vmatprep.mubr.f32.mxu0 %v955_v13 }
  0x3a   :  { %772 = vmatpush3.bf16.msra.mxu1 %v769_v42  ;;  %796 = vmatpush3.bf16.msra.mxu0 %v793_v43 }
  0x3b   :  { %774 = vmatprep.subr.bf16.mxu1 %v773_v44  ;;  %798 = vmatprep.subr.bf16.mxu0 %v757_v12 }
  0x3d   :  { %711 = vmatmul.mubr.f32.vlgmr.msra.gmra.mrb[0].mxu1 %v957_v14  ;;  %744 = vmatmul.mubr.f32.vlgmr.msra.gmra.mrb[0].mxu0 %v957_v14 }
  0x3e   :  { %776 = vmatpush3.bf16.msra.mxu1 %v773_v44  ;;  %800 = vmatpush3.bf16.msra.mxu0 %v757_v12 }
  0x3f   :  { %778 = vmatprep.subr.bf16.mxu1 %v777_v45  ;;  %802 = vmatprep.subr.bf16.mxu0 %v761_v16 }
  0x40   :  { %721 = vmatprep.mubr.f32.mxu1 %v131_v20  ;;  %754 = vmatprep.mubr.f32.mxu0 %v955_v13  ;;  %v629_v20 = vrot.slane %v49_v49, %v628_v17 }
  0x42   :  { %780 = vmatpush3.bf16.msra.mxu1 %v777_v45  ;;  %804 = vmatpush3.bf16.msra.mxu0 %v761_v16  ;;  %v622_v16 = vsub.s32 1, %v51_v47 }
  0x44   :  { %v623_v18 = vrot.slane %v49_v49, %v622_v16 }
  0x45   :  { %722 = vmatmul.mubr.f32.vlgmr.msra.gmra.mrb[0].mxu1 %v141_v21  ;;  %755 = vmatmul.mubr.f32.vlgmr.msra.gmra.mrb[0].mxu0 %v957_v14 }
 0x118   :  { %v723_v52 = vpop.f32.mrb[0].mxu1  ;;  %v756_v53 = vpop.f32.mrb[0].mxu0 }
 0x119   :  { %v805_v54 = vadd.f32 %v723_v52, %v53_v51  ;;  %v323_v55 = vpop.f32.mrb[1].mxu1  ;;  %v579_v56 = vpop.f32.mrb[1].mxu0 }
 0x11a   :  { %v807_v57 = vadd.f32 %v323_v55, %v53_v51 }
 0x11b   :  { %v806_v58 = vadd.f32 %v805_v54, %v756_v53 }
 0x11c   :  { %v808_v61 = vadd.f32 %v807_v57, %v579_v56 }
 0x11d   :  { %v595_v63 = vmul.f32 %v806_v58, %v654_v60 }
 0x11e   :  { %v594_v62 = vmul.f32 %v808_v61, %v654_v60 }
 0x120   :  { %596 = vadd.xlane.f32.xlu0 %v594_v62 }
 0x124   :  { %598 = vadd.xlane.f32.xlu0 %v595_v63 }
 0x1ad   :  { %v597_v0 = vpop.xlane.xlu0 %596 }
 0x1ae   :  { %v600_v1 = vmul.f32 0.03125, %v597_v0 }
 0x1b0   :  { %v602_v2 = vsub.f32 %v594_v62, %v600_v1 }
 0x1b1   :  { %v599_v3 = vpop.xlane.xlu0 %598 }
 0x1b2   :  { %v601_v4 = vmul.f32 0.03125, %v599_v3  ;;  %v604_v5 = vmul.f32 %v654_v60, %v602_v2 }
 0x1b4   :  { %v603_v6 = vsub.f32 %v595_v63, %v601_v4  ;;  %v606_v7 = vmul.f32 %v604_v5, %v604_v5 }
 0x1b6   :  { %608 = vadd.xlane.f32.xlu1 %v606_v7  ;;  %v605_v8 = vmul.f32 %v654_v60, %v603_v6 }
 0x1b8   :  { %v607_v9 = vmul.f32 %v605_v8, %v605_v8 }
 0x1ba   :  { %610 = vadd.xlane.f32.xlu1 %v607_v9 }
 0x243   :  { %v609_v10 = vpop.xlane.xlu1 %608 }
 0x244   :  { %v612_v11 = vmul.f32 0.03125, %v609_v10 }
 0x246   :  { %v614_v12 = vadd.f32 1e-06, %v612_v11 }
 0x247   :  { %v611_v13 = vpop.xlane.xlu1 %610 }
 0x248   :  { %823 = vrsqrt.f32 %v614_v12  ;;  %v613_v14 = vmul.f32 0.03125, %v611_v13 }
 0x24a   :  { %v615_v15 = vadd.f32 1e-06, %v613_v14 }
 0x24c   :  { %825 = vrsqrt.f32 %v615_v15 }
 0x252   :  { %v824_v19 = vpop.eup %823 }
 0x253   :  { %v618_v21 = vmul.f32 %v824_v19, %v604_v5 }
 0x255   :  { %v624_v22 = vmul.f32 %v623_v18, %v618_v21 }
 0x256   :  { %v826_v23 = vpop.eup %825 }
 0x257   :  { %v619_v24 = vmul.f32 %v826_v23, %v605_v8  ;;  %v630_v25 = vadd.f32 %v629_v20, %v624_v22 }
 0x259   :  { %v625_v26 = vmul.f32 %v623_v18, %v619_v24  ;;  %v632_v27 = vmax.f32 %v630_v25, 0.0 }
 0x25b   :  { %v631_v28 = vadd.f32 %v629_v20, %v625_v26  ;;  %634 = vst [vmem:[#allocation7] sm:$0xff] %v632_v27 }
 0x25d   :  { %v633_v29 = vmax.f32 %v631_v28, 0.0 }
 0x25f   :  { %635 = vst [vmem:[#allocation7 + $0x8] sm:$0xff] %v633_v29 }
 0x260   :  { %882 = shalt.err (!%p879_p6)
}
 0x261   :  { %s883_s15 = scalar_lea.hbm %s988_s3, 256 }
 0x262   :  { %p884_p7 = scmp.ne.s32.totalorder %s988_s3, %s883_s15  ;;  %p887_p8 = scmp.lt.u32.totalorder %s883_s15, %s988_s3 }
 0x264   :  { %p889_p9 = pnand %p887_p8, %p884_p7 }
 0x266   :  { %892 = shalt.err (!%p889_p9)
}
 0x267   :  { %647 = dma.vmem_to_hbm [thread:$0]  %s642_s11, 256, %s988_s3, [#allocation4], %s900_s22, %s900_s22, %s901_s23  }
 0x268   :  { %897 = dma.done.wait [#allocation4], 256  }
 0x269   :  { %898 = vsyncadd [#allocation4], 4294967040 }
 0x26a   :  { %651 = vsyncpa [#allocation3], 1 }
 0x26b   :  { %652 = vsyncpa [#allocation6], 1 }
 0x26c   :  { %653 = vsyncpa [#allocation4], 1 }

</bundles_post_ra>
